<compile_context>
chip_gen: v7x
topology: tpu7x:2x2x1
jax: 0.10.0
libtpu: 0.0.40
codegen_flags: <defaults>
</compile_context>

<pallas_src>
import jax
import jax.numpy as jnp
from jax import lax
from jax.experimental import pallas as pl
from jax.experimental.pallas import tpu as pltpu

_VMEM_LIMIT = 32 * 1024 * 1024  # explicit; flash tiling keeps all blocks far
                                # below v7x's 64 MiB physical VMEM.


def _pick_tile(n, target=256):
    """Largest multiple-of-8 divisor of n that is <= target, else full n."""
    start = min(n, target)
    for t in range(start, 7, -8):
        if t % 8 == 0 and n % t == 0:
            return t
    return n


# ----------------------------------------------------------------------------
# Stage 1: head-major QKV projection.  x:(1,N,D)  W*: (1,D,d)  ->  (1,1,N,d)
# ----------------------------------------------------------------------------
def _qkv_kernel(x_ref, wq_ref, wk_ref, wv_ref, q_ref, k_ref, v_ref):
    x = x_ref[0].astype(jnp.bfloat16)                     # (N, D) bf16 MXU operand
    q_ref[0, 0] = jnp.dot(x, wq_ref[0],
                          preferred_element_type=jnp.float32).astype(q_ref.dtype)
    k_ref[0, 0] = jnp.dot(x, wk_ref[0],
                          preferred_element_type=jnp.float32).astype(k_ref.dtype)
    v_ref[0, 0] = jnp.dot(x, wv_ref[0],
                          preferred_element_type=jnp.float32).astype(v_ref.dtype)


# ----------------------------------------------------------------------------
# Stage 2: flash attention with online softmax.  kv tiles are the (last,
# "arbitrary") reduction axis; m/l/acc live in fp32 VMEM scratch.
# ----------------------------------------------------------------------------
def _flash_kernel(q_ref, k_ref, v_ref, o_ref, m_sc, l_sc, acc_sc):
    ki = pl.program_id(3)

    @pl.when(ki == 0)
    def _():
        m_sc[...] = jnp.full(m_sc.shape, -jnp.inf, dtype=m_sc.dtype)
        l_sc[...] = jnp.zeros(l_sc.shape, dtype=l_sc.dtype)
        acc_sc[...] = jnp.zeros(acc_sc.shape, dtype=acc_sc.dtype)

    q = q_ref[0, 0]                                       # (tq, d) bf16, pre-scaled
    k = k_ref[0, 0]                                       # (tk, d) bf16
    v = v_ref[0, 0]                                       # (tk, d) bf16

    # scores: contract last dim of both (nd,md->nm) — no materialized transpose.
    s = lax.dot_general(q, k, (((1,), (1,)), ((), ())),
                        preferred_element_type=jnp.float32)  # (tq, tk) fp32

    m_prev = m_sc[...]
    m_new = jnp.maximum(m_prev, jnp.max(s, axis=-1, keepdims=True))
    alpha = jnp.exp(m_prev - m_new)
    p = jnp.exp(s - m_new)

    l_sc[...] = alpha * l_sc[...] + jnp.sum(p, axis=-1, keepdims=True)
    acc_sc[...] = alpha * acc_sc[...] + jnp.dot(
        p.astype(v.dtype), v, preferred_element_type=jnp.float32)
    m_sc[...] = m_new

    @pl.when(ki == pl.num_programs(3) - 1)
    def _():
        inv_l = pl.reciprocal(l_sc[...], approx=True)     # EUP slot, ~free
        o_ref[0, 0] = (acc_sc[...] * inv_l).astype(o_ref.dtype)


# ----------------------------------------------------------------------------
# Stage 3: output projection accumulated per head (no lane-axis concat).
# grid (B, q_tiles, H); H is the (last, "arbitrary") reduction axis.
# ----------------------------------------------------------------------------
def _out_proj_kernel(oh_ref, w_ref, b_ref, out_ref, acc_sc):
    h = pl.program_id(2)

    @pl.when(h == 0)
    def _():
        acc_sc[...] = jnp.zeros(acc_sc.shape, dtype=acc_sc.dtype)

    acc_sc[...] += jnp.dot(oh_ref[0, 0], w_ref[0],
                           preferred_element_type=jnp.float32)

    @pl.when(h == pl.num_programs(2) - 1)
    def _():
        out_ref[0] = (acc_sc[...] + b_ref[...].astype(jnp.float32)).astype(out_ref.dtype)


# ----------------------------------------------------------------------------
# Wrapper
# ----------------------------------------------------------------------------
def attention_pallas(x, wqkv, wout, bout, *, heads, dim_head, project_out=True):
    B, N, D = x.shape
    H, d = heads, dim_head
    inner = H * d
    scale = d ** (-0.5)

    # Wrapper-side weight prepack: head-major layout, scale folded into Wq, bf16.
    wq, wk, wv = jnp.split(wqkv, 3, axis=1)               # each (D, inner)

    def to_head_major(w):                                 # (D, inner) -> (H, D, d)
        return w.reshape(D, H, d).transpose(1, 0, 2)

    wq_h = (to_head_major(wq) * scale).astype(jnp.bfloat16)
    wk_h = to_head_major(wk).astype(jnp.bfloat16)
    wv_h = to_head_major(wv).astype(jnp.bfloat16)

    # ---- Stage 1: head-major q/k/v (bf16) --------------------------------
    q, k, v = pl.pallas_call(
        _qkv_kernel,
        out_shape=tuple(jax.ShapeDtypeStruct((B, H, N, d), jnp.bfloat16)
                        for _ in range(3)),
        grid_spec=pltpu.PrefetchScalarGridSpec(
            num_scalar_prefetch=0,
            grid=(B, H),
            in_specs=[
                pl.BlockSpec((1, N, D), lambda b, h: (b, 0, 0)),   # x row
                pl.BlockSpec((1, D, d), lambda b, h: (h, 0, 0)),   # Wq[h]
                pl.BlockSpec((1, D, d), lambda b, h: (h, 0, 0)),   # Wk[h]
                pl.BlockSpec((1, D, d), lambda b, h: (h, 0, 0)),   # Wv[h]
            ],
            out_specs=[
                pl.BlockSpec((1, 1, N, d), lambda b, h: (b, h, 0, 0)),
                pl.BlockSpec((1, 1, N, d), lambda b, h: (b, h, 0, 0)),
                pl.BlockSpec((1, 1, N, d), lambda b, h: (b, h, 0, 0)),
            ],
        ),
        compiler_params=pltpu.CompilerParams(
            dimension_semantics=("parallel", "parallel"),
            vmem_limit_bytes=_VMEM_LIMIT),
    )(x, wq_h, wk_h, wv_h)

    # ---- Stage 2: flash attention ----------------------------------------
    tq = _pick_tile(N)
    tk = _pick_tile(N)
    o_heads = pl.pallas_call(
        _flash_kernel,
        out_shape=jax.ShapeDtypeStruct((B, H, N, d), jnp.bfloat16),
        grid_spec=pltpu.PrefetchScalarGridSpec(
            num_scalar_prefetch=0,
            grid=(B, H, N // tq, N // tk),
            in_specs=[
                pl.BlockSpec((1, 1, tq, d), lambda b, h, qi, ki: (b, h, qi, 0)),
                pl.BlockSpec((1, 1, tk, d), lambda b, h, qi, ki: (b, h, ki, 0)),
                pl.BlockSpec((1, 1, tk, d), lambda b, h, qi, ki: (b, h, ki, 0)),
            ],
            out_specs=pl.BlockSpec((1, 1, tq, d),
                                   lambda b, h, qi, ki: (b, h, qi, 0)),
            scratch_shapes=[
                pltpu.VMEM((tq, 1), jnp.float32),   # running max m
                pltpu.VMEM((tq, 1), jnp.float32),   # running denom l
                pltpu.VMEM((tq, d), jnp.float32),   # un-normalized output acc
            ],
        ),
        compiler_params=pltpu.CompilerParams(
            dimension_semantics=("parallel", "parallel", "parallel", "arbitrary"),
            vmem_limit_bytes=_VMEM_LIMIT),
    )(q, k, v)

    if not project_out:
        # heads == 1 and dim_head == dim -> nn.Identity() output projection.
        return o_heads[:, 0].astype(x.dtype)

    # ---- Stage 3: per-head accumulated output projection + bias -----------
    # NOTE: for production D (768/1024) the output last dim is a 128-multiple
    # (lane-dense stores); for the toy D=32 demo partial stores are acceptable.
    wout_h = wout.reshape(H, d, D).astype(jnp.bfloat16)   # (H, d, D)
    bout2d = bout.reshape(1, D).astype(jnp.float32)
    tq3 = _pick_tile(N)
    out = pl.pallas_call(
        _out_proj_kernel,
        out_shape=jax.ShapeDtypeStruct((B, N, D), x.dtype),
        grid_spec=pltpu.PrefetchScalarGridSpec(
            num_scalar_prefetch=0,
            grid=(B, N // tq3, H),
            in_specs=[
                pl.BlockSpec((1, 1, tq3, d), lambda b, qi, h: (b, h, qi, 0)),
                pl.BlockSpec((1, d, D), lambda b, qi, h: (h, 0, 0)),
                pl.BlockSpec((1, D), lambda b, qi, h: (0, 0)),
            ],
            out_specs=pl.BlockSpec((1, tq3, D), lambda b, qi, h: (b, qi, 0)),
            scratch_shapes=[pltpu.VMEM((tq3, D), jnp.float32)],
        ),
        compiler_params=pltpu.CompilerParams(
            dimension_semantics=("parallel", "parallel", "arbitrary"),
            vmem_limit_bytes=_VMEM_LIMIT),
    )(o_heads, wout_h, bout2d)
    return out


def attention_ref(x, wqkv, wout, bout, *, heads, dim_head):
    """Pure-JAX fp32 reference mirroring the PyTorch forward."""
    B, N, D = x.shape
    inner = heads * dim_head
    scale = dim_head ** (-0.5)
    qkv = x @ wqkv                                        # (B, N, 3*inner)
    q, k, v = jnp.split(qkv, 3, axis=-1)

    def to_heads(t):                                      # 'b n (h d) -> b h n d'
        return t.reshape(B, N, heads, dim_head).transpose(0, 2, 1, 3)

    q, k, v = map(to_heads, (q, k, v))
    dots = jnp.einsum('bhnd,bhmd->bhnm', q, k) * scale
    attn = jax.nn.softmax(dots, axis=-1)
    out = jnp.einsum('bhnm,bhmd->bhnd', attn, v)
    out = out.transpose(0, 2, 1, 3).reshape(B, N, inner)  # 'b h n d -> b n (h d)'
    return out @ wout + bout


if __name__ == "__main__":
    # Small shapes consistent with the module's forward.
    B, N, D = 2, 8, 32
    heads, dim_head = 4, 8           # inner = 32; heads != 1 -> project_out = True

    key = jax.random.PRNGKey(0)
    kx, kq, kw, kb = jax.random.split(key, 4)

    x = jax.random.normal(kx, (B, N, D), dtype=jnp.float32)
    wqkv = jax.random.normal(kq, (D, 3 * heads * dim_head), dtype=jnp.float32) * 0.05
    wout = jax.random.normal(kw, (heads * dim_head, D), dtype=jnp.float32) * 0.05
    bout = jax.random.normal(kb, (D,), dtype=jnp.float32) * 0.05

    out = attention_pallas(x, wqkv, wout, bout, heads=heads, dim_head=dim_head)
    out = jax.block_until_ready(out)

    ref = attention_ref(x, wqkv, wout, bout, heads=heads, dim_head=dim_head)
    assert out.shape == (B, N, D)
    # bf16 MXU operands (fp32 accumulation / softmax stats) -> relaxed tolerance.
    assert jnp.allclose(out, ref, atol=2e-2, rtol=2e-2), "mismatch vs reference"

    print("KERNEL_OK")
</pallas_src>

<mosaic_0001>
module attributes {stable_mosaic.version = 11 : i64} {
  func.func @_qkv_kernel(%arg0: i32, %arg1: i32, %arg2: memref<1x8x32xf32, #tpu.memory_space<vmem>>, %arg3: memref<1x32x8xbf16, #tpu.memory_space<vmem>>, %arg4: memref<1x32x8xbf16, #tpu.memory_space<vmem>>, %arg5: memref<1x32x8xbf16, #tpu.memory_space<vmem>>, %arg6: memref<1x1x8x8xbf16, #tpu.memory_space<vmem>>, %arg7: memref<1x1x8x8xbf16, #tpu.memory_space<vmem>>, %arg8: memref<1x1x8x8xbf16, #tpu.memory_space<vmem>>) attributes {dimension_semantics = [#tpu.dimension_semantics<parallel>, #tpu.dimension_semantics<parallel>], iteration_bounds = array<i64: 2, 4>, scalar_prefetch = 0 : i64, scratch_operands = 0 : i64, tpu.core_type = #tpu.core_type<tc>, window_params = [{transform_indices = @transform_0, window_bounds = array<i64: 1, 8, 32>}, {transform_indices = @transform_1, window_bounds = array<i64: 1, 32, 8>}, {transform_indices = @transform_2, window_bounds = array<i64: 1, 32, 8>}, {transform_indices = @transform_3, window_bounds = array<i64: 1, 32, 8>}, {transform_indices = @transform_4, window_bounds = array<i64: 1, 1, 8, 8>}, {transform_indices = @transform_5, window_bounds = array<i64: 1, 1, 8, 8>}, {transform_indices = @transform_6, window_bounds = array<i64: 1, 1, 8, 8>}]} {
    %c0 = arith.constant 0 : index
    %c0_0 = arith.constant 0 : index
    %c0_1 = arith.constant 0 : index
    %0 = vector.load %arg2[%c0, %c0_0, %c0_1] : memref<1x8x32xf32, #tpu.memory_space<vmem>>, vector<1x8x32xf32>
    %1 = vector.shape_cast %0 : vector<1x8x32xf32> to vector<8x32xf32>
    %2 = arith.truncf %1 : vector<8x32xf32> to vector<8x32xbf16>
    %c0_2 = arith.constant 0 : index
    %c0_3 = arith.constant 0 : index
    %c0_4 = arith.constant 0 : index
    %3 = vector.load %arg3[%c0_2, %c0_3, %c0_4] : memref<1x32x8xbf16, #tpu.memory_space<vmem>>, vector<1x32x8xbf16>
    %4 = vector.shape_cast %3 : vector<1x32x8xbf16> to vector<32x8xbf16>
    %cst = arith.constant dense<0.000000e+00> : vector<8x8xf32>
    %5 = tpu.matmul %2, %4, %cst {dimension_numbers = #tpu.dot_dimension_numbers<[1], [0], [0], [1], [0, 0, 1, 1], [], []>} : vector<8x32xbf16>, vector<32x8xbf16>, vector<8x8xf32> -> vector<8x8xf32>
    %6 = arith.truncf %5 : vector<8x8xf32> to vector<8x8xbf16>
    %c0_5 = arith.constant 0 : index
    %c0_6 = arith.constant 0 : index
    %c0_7 = arith.constant 0 : index
    %c0_8 = arith.constant 0 : index
    %7 = vector.load %arg6[%c0_5, %c0_6, %c0_7, %c0_8] : memref<1x1x8x8xbf16, #tpu.memory_space<vmem>>, vector<1x1x8x8xbf16>
    %8 = vector.shape_cast %7 : vector<1x1x8x8xbf16> to vector<8x8xbf16>
    %9 = vector.shape_cast %6 : vector<8x8xbf16> to vector<1x1x8x8xbf16>
    tpu.vector_store %arg6[%c0_5, %c0_6, %c0_7, %c0_8], %9 {strides = array<i32>} : memref<1x1x8x8xbf16, #tpu.memory_space<vmem>>, vector<1x1x8x8xbf16>,
    %c0_9 = arith.constant 0 : index
    %c0_10 = arith.constant 0 : index
    %c0_11 = arith.constant 0 : index
    %10 = vector.load %arg4[%c0_9, %c0_10, %c0_11] : memref<1x32x8xbf16, #tpu.memory_space<vmem>>, vector<1x32x8xbf16>
    %11 = vector.shape_cast %10 : vector<1x32x8xbf16> to vector<32x8xbf16>
    %cst_12 = arith.constant dense<0.000000e+00> : vector<8x8xf32>
    %12 = tpu.matmul %2, %11, %cst_12 {dimension_numbers = #tpu.dot_dimension_numbers<[1], [0], [0], [1], [0, 0, 1, 1], [], []>} : vector<8x32xbf16>, vector<32x8xbf16>, vector<8x8xf32> -> vector<8x8xf32>
    %13 = arith.truncf %12 : vector<8x8xf32> to vector<8x8xbf16>
    %c0_13 = arith.constant 0 : index
    %c0_14 = arith.constant 0 : index
    %c0_15 = arith.constant 0 : index
    %c0_16 = arith.constant 0 : index
    %14 = vector.load %arg7[%c0_13, %c0_14, %c0_15, %c0_16] : memref<1x1x8x8xbf16, #tpu.memory_space<vmem>>, vector<1x1x8x8xbf16>
    %15 = vector.shape_cast %14 : vector<1x1x8x8xbf16> to vector<8x8xbf16>
    %16 = vector.shape_cast %13 : vector<8x8xbf16> to vector<1x1x8x8xbf16>
    tpu.vector_store %arg7[%c0_13, %c0_14, %c0_15, %c0_16], %16 {strides = array<i32>} : memref<1x1x8x8xbf16, #tpu.memory_space<vmem>>, vector<1x1x8x8xbf16>,
    %c0_17 = arith.constant 0 : index
    %c0_18 = arith.constant 0 : index
    %c0_19 = arith.constant 0 : index
    %17 = vector.load %arg5[%c0_17, %c0_18, %c0_19] : memref<1x32x8xbf16, #tpu.memory_space<vmem>>, vector<1x32x8xbf16>
    %18 = vector.shape_cast %17 : vector<1x32x8xbf16> to vector<32x8xbf16>
    %cst_20 = arith.constant dense<0.000000e+00> : vector<8x8xf32>
    %19 = tpu.matmul %2, %18, %cst_20 {dimension_numbers = #tpu.dot_dimension_numbers<[1], [0], [0], [1], [0, 0, 1, 1], [], []>} : vector<8x32xbf16>, vector<32x8xbf16>, vector<8x8xf32> -> vector<8x8xf32>
    %20 = arith.truncf %19 : vector<8x8xf32> to vector<8x8xbf16>
    %c0_21 = arith.constant 0 : index
    %c0_22 = arith.constant 0 : index
    %c0_23 = arith.constant 0 : index
    %c0_24 = arith.constant 0 : index
    %21 = vector.load %arg8[%c0_21, %c0_22, %c0_23, %c0_24] : memref<1x1x8x8xbf16, #tpu.memory_space<vmem>>, vector<1x1x8x8xbf16>
    %22 = vector.shape_cast %21 : vector<1x1x8x8xbf16> to vector<8x8xbf16>
    %23 = vector.shape_cast %20 : vector<8x8xbf16> to vector<1x1x8x8xbf16>
    tpu.vector_store %arg8[%c0_21, %c0_22, %c0_23, %c0_24], %23 {strides = array<i32>} : memref<1x1x8x8xbf16, #tpu.memory_space<vmem>>, vector<1x1x8x8xbf16>,
    return
  }
  func.func @transform_0(%arg0: i32, %arg1: i32) -> (i32, i32, i32) {
    %c0_i32 = arith.constant 0 : i32
    %c0_i32_0 = arith.constant 0 : i32
    %c0_i32_1 = arith.constant 0 : i32
    return %arg0, %c0_i32, %c0_i32_0 : i32, i32, i32
  }
  func.func @transform_1(%arg0: i32, %arg1: i32) -> (i32, i32, i32) {
    %c0_i32 = arith.constant 0 : i32
    %c0_i32_0 = arith.constant 0 : i32
    %c0_i32_1 = arith.constant 0 : i32
    return %arg1, %c0_i32, %c0_i32_0 : i32, i32, i32
  }
  func.func @transform_2(%arg0: i32, %arg1: i32) -> (i32, i32, i32) {
    %c0_i32 = arith.constant 0 : i32
    %c0_i32_0 = arith.constant 0 : i32
    %c0_i32_1 = arith.constant 0 : i32
    return %arg1, %c0_i32, %c0_i32_0 : i32, i32, i32
  }
  func.func @transform_3(%arg0: i32, %arg1: i32) -> (i32, i32, i32) {
    %c0_i32 = arith.constant 0 : i32
    %c0_i32_0 = arith.constant 0 : i32
    %c0_i32_1 = arith.constant 0 : i32
    return %arg1, %c0_i32, %c0_i32_0 : i32, i32, i32
  }
  func.func @transform_4(%arg0: i32, %arg1: i32) -> (i32, i32, i32, i32) {
    %c0_i32 = arith.constant 0 : i32
    %c0_i32_0 = arith.constant 0 : i32
    %c0_i32_1 = arith.constant 0 : i32
    return %arg0, %arg1, %c0_i32, %c0_i32_0 : i32, i32, i32, i32
  }
  func.func @transform_5(%arg0: i32, %arg1: i32) -> (i32, i32, i32, i32) {
    %c0_i32 = arith.constant 0 : i32
    %c0_i32_0 = arith.constant 0 : i32
    %c0_i32_1 = arith.constant 0 : i32
    return %arg0, %arg1, %c0_i32, %c0_i32_0 : i32, i32, i32, i32
  }
  func.func @transform_6(%arg0: i32, %arg1: i32) -> (i32, i32, i32, i32) {
    %c0_i32 = arith.constant 0 : i32
    %c0_i32_0 = arith.constant 0 : i32
    %c0_i32_1 = arith.constant 0 : i32
    return %arg0, %arg1, %c0_i32, %c0_i32_0 : i32, i32, i32, i32
  }
}

</mosaic_0001>

<bundles_post_ra>
// kernel: tpu_custom_call.1
= control target key start
LH: loop header
LB: loop body
LE: loop exit
PB: predicated region body
PF: predicated region fallthrough
CT: control target
= control target key end

     0   :  { %12 = vsyncpa [#allocation3], 0  ;;  %s1354_s0 = inlined_call_operand.vmem [shape: f32[2,8,32], index: 0, kind: input, shape index: {}]   ;;  %s1355_s1 = inlined_call_operand.vmem [shape: bf16[4,32,8], index: 1, kind: input, shape index: {}]   ;;  %s1356_s2 = inlined_call_operand.vmem [shape: bf16[4,32,8], index: 2, kind: input, shape index: {}]   ;;  %s1357_s3 = inlined_call_operand.vmem [shape: bf16[4,32,8], index: 3, kind: input, shape index: {}]   ;;  %s1358_s4 = inlined_call_operand.hbm [shape: bf16[2,4,8,8], index: 4, kind: output, shape index: {0}]   ;;  %s1359_s5 = inlined_call_operand.hbm [shape: bf16[2,4,8,8], index: 5, kind: output, shape index: {1}]   ;;  %s1360_s6 = inlined_call_operand.hbm [shape: bf16[2,4,8,8], index: 6, kind: output, shape index: {2}]  }
   0x1   :  { %14 = vsyncpa [#allocation3 + $0x1], 0 }
   0x2   :  { %15 = vsyncpa [#allocation5], 0 }
   0x3   :  { %17 = vsyncpa [#allocation5 + $0x1], 0  ;;  %s1110_s21 = smov 0   ;;  %s1112_s22 = smov 0  }
   0x4   :  { %s1114_s23 = smov 0   ;;  %s1116_s24 = smov 0  }
   0x5   :  { %s1118_s25 = smov 0   ;;  %s1120_s26 = smov 0  }
   0x6   :  { %s1122_s27 = smov 0   ;;  %s1124_s28 = smov 0  }
   0x7 LB: > { %1367 = sst [smem:[#allocation9_spill]] %s1060_s26  ;;  %s1362_s29 = sadd.s32 4294967295, %s1068_s28   ;;  %s1068_s28 = sphi %s1124_s28, %s23_s28   ;;  %s1064_s27 = sphi %s1122_s27, %s1380_s27   ;;  %s1060_s26 = sphi %s1120_s26, %s1379_s26   ;;  %s1056_s25 = sphi %s1118_s25, %s1378_s25   ;;  %s1052_s24 = sphi %s1116_s24, %s1377_s24   ;;  %s1048_s23 = sphi %s1114_s23, %s1383_s23   ;;  %s1044_s22 = sphi %s1112_s22, %s1382_s22   ;;  %s1040_s21 = sphi %s1110_s21, %s1381_s21  }
   0x8   : > { %1368 = sst [smem:[#allocation10_spill]] %s1064_s27  ;;  %s1361_s30 = sadd.s32 4294967294, %s1068_s28  }
   0x9   : > { %s32_s7 = sadd.s32 1, %s1060_s26  ;;  %s35_s8 = sadd.s32 1, %s1064_s27 }
   0xa   : > { %p33_p0 = scmp.ge.s32.totalorder %s32_s7, 4  ;;  %p158_p1 = scmp.ne.s32.totalorder %s1048_s23, %s1044_s22 }
   0xb   : > { %p159_p2 = scmp.eq.s32.totalorder %s1362_s29, 7  ;;  %p164_p5 = scmp.ne.s32.totalorder %s1044_s22, %s1040_s21 }
   0xc   : > { %s1385_s7 = smov (%p33_p0, %s32_s7), 0  ;;  %s1387_s8 = smov (!%p33_p0, %s35_s8), %s1064_s27 }
   0xd   : > { %1369 = sst [smem:[#allocation11_spill]] %s1385_s7  ;;  %s144_s9 = ssub.s32 %s1060_s26, %s1385_s7 }
   0xe   : > { %p1163_p3 = por %p159_p2, %p158_p1  ;;  %p37_p4 = scmp.ge.s32.totalorder %s1387_s8, 2 }
   0xf   : > { %p165_p6 = scmp.eq.s32.totalorder %s1361_s30, 7  ;;  %p758_p7 = scmp.ge.s32.totalorder %s1068_s28, 1 }
  0x10   : > { %s1389_s8 = smov (%p37_p4, %s1387_s8), 0  ;;  %p270_p9 = scmp.lt.s32.totalorder %s1068_s28, 9 }
  0x11   : > { %1371 = sst [smem:[#allocation12_spill]] %s1389_s8  ;;  %p1174_p8 = por %p165_p6, %p164_p5 }
  0x12   : > { %s143_s12 = ssub.s32 %s1064_s27, %s1389_s8  ;;  %s148_s13 = sadd.s32 1, %s1048_s23 }
  0x13   : > { %s145_s14 = sor.u32 %s144_s9, %s143_s12  ;;  %p271_p10 = pnand %p758_p7, %p270_p9 }
  0x14   : > { %p146_p11 = scmp.eq.s32.totalorder %s145_s14, 0  ;;  %p328_p12 = scmp.lt.s32.totalorder (!%p271_p10), %s1052_s24, 3  ;;  %v1070_v0 = vmov (!%p271_p10), 0.0   ;;  %vm1071_vm0 = vmmov (!%p271_p10), 0   ;;  %vm362_vm1 = vcmask (!%p271_p10), 261120   ;;  %vm407_vm2 = vcmask (!%p271_p10), 60416  }
  0x15   : > { %274 = sbr.rel (%p271_p10) target bundleno = 316 (0x13c), region = 36  ;;  %p324_p13 = scmp.lt.s32.totalorder (!%p271_p10), %s1056_s25, 1  ;;  %801 = vmatprep.subr.bf16.mxu0 (!%p271_p10), %v1070_v0  ;;  %809 = vmatprep.subr.bf16.mxu1 (!%p271_p10), %v1070_v0 }
  0x16   : > { %s1183_s15 = scalar_select %p146_p11, %s1048_s23, %s148_s13  }
  0x17   : > { %805 = vmatprep.mubr.msk.bf16.mxu0 (!%p271_p10), %vm1071_vm0, %v1070_v0  ;;  %813 = vmatprep.mubr.msk.bf16.mxu1 (!%p271_p10), %vm1071_vm0, %v1070_v0  ;;  %s307_s26 = sand.u32 (!%p271_p10), 1, %s1044_s22   ;;  %s781_s27 = sshll.u32 (!%p271_p10), %s1056_s25, 2 }
  0x18   : > { %1373 = sst [smem:[#allocation13_spill]] %s1183_s15  ;;  %s1206_s29 = sshll.u32 (!%p271_p10), %s307_s26, 2 }
  0x19   : > { %s309_s8 = scalar_lea.vmem (!%p271_p10), [#allocation2], %s1206_s29 }
  0x1c   : > { %s329_s16 = scalar_select %p328_p12, %s1052_s24, 3 }
  0x1d   : > { %s325_s17 = scalar_select %p324_p13, %s1056_s25, 1 }
  0x1e   : > { %s789_s18 = sshll.u32 %s329_s16, 4  ;;  %s1374_s16 = sadd.s32 4294967295, %s1068_s28  }
  0x1f   : > { %s332_s9 = scalar_lea.vmem %s1355_s1, %s789_s18  ;;  %s337_s14 = scalar_lea.vmem %s1356_s2, %s789_s18 }
  0x20   : > { %v908_v1 = vld [vmem:[%s332_s9] sm:$0xff]   ;;  %s762_s30 = sshll.u32 %s325_s17, 3  ;;  %v909_v2 = vld [vmem:[%s332_s9 + $0x8] sm:$0xff]   ;;  %s342_s15 = scalar_lea.vmem %s1357_s3, %s789_s18 }
  0x21   : > { %s327_s7 = scalar_lea.vmem %s1354_s0, %s762_s30  ;;  %802 = vmatpush3.bf16.msra.mxu0 %v908_v1  ;;  %v910_v3 = vld [vmem:[%s337_s14] sm:$0xff]   ;;  %v912_v6 = vld [vmem:[%s337_s14 + $0x8] sm:$0xff]   ;;  %s547_s30 = sadd.s32 %s1052_s24, %s781_s27 }
  0x22   : > { %803 = vmatprep.subr.bf16.mxu0 %v1070_v0  ;;  %v344_v4 = vld [vmem:[%s327_s7] sm:$0xff]  ;;  %810 = vmatpush3.bf16.msra.mxu1 %v910_v3  ;;  %v913_v8 = vld [vmem:[%s342_s15 + $0x8] sm:$0xff]   ;;  %s1209_s7 = sshll.u32 %s547_s30, 6  ;;  %s1214_s17 = sand.u32 1, %s1374_s16  }
  0x23   : > { %v345_v5 = vpack.c.bf16 %v344_v4, %v344_v4  ;;  %811 = vmatprep.subr.bf16.mxu1 %v1070_v0  ;;  %v911_v7 = vld [vmem:[%s342_s15] sm:$0xff]   ;;  %s551_s15 = sshll.u32 %s309_s8, 4  ;;  %s316_s18 = scalar_lea.vmem [#allocation4], %s1206_s29  ;;  %s1225_s15 = int_to_ptr.vmem [resolvable:$true] %s551_s15 }
  0x24   : > { %s566_s25 = sshll.u32 %s316_s18, 4  ;;  %s1223_s24 = scalar_lea.hbm %s1358_s4, %s1209_s7  ;;  %s1233_s25 = int_to_ptr.vmem [resolvable:$true] %s566_s25 }
  0x25   : > { %804 = vmatpush3.bf16.msra.mxu0 %v909_v2  ;;  %s1231_s13 = scalar_lea.hbm %s1359_s5, %s1209_s7  ;;  %s526_s14 = scalar_lea.sflag [#allocation3], %s307_s26 }
  0x26   : > { %817 = vmatprep.subr.bf16.mxu0 %v1070_v0  ;;  %812 = vmatpush3.bf16.msra.mxu1 %v912_v6  ;;  %s914_s27 = scalar_lea.vmem %s1225_s15, 64  ;;  %s1072_s30 = smov [#allocation2]  }
  0x27   : > { %p915_p0 = scmp.ne.s32.totalorder %s1225_s15, %s914_s27  ;;  %s918_s16 = sshll.u32 %s1072_s30, 4  ;;  %s919_s16 = int_to_ptr.vmem [resolvable:$false] %s918_s16 }
  0x28   : > { %806 = vmatmul.mubr.msk.bf16.vlgmr.msra.gmra.mrb[0].mxu0 %vm362_vm1, %v345_v5  ;;  %s920_s19 = scalar_lea.vmem %s919_s16, 128  ;;  %p921_p4 = scmp.lt.s32.totalorder %s1225_s15, %s919_s16 }
  0x29   : > { %818 = vmatpush3.bf16.msra.mxu0 %v911_v7  ;;  %821 = vmatprep.mubr.msk.bf16.mxu0 %vm1071_vm0, %v1070_v0  ;;  %p916_p1 = pnand %p915_p0, %p1163_p3  ;;  %p922_p5 = scmp.lt.s32.totalorder %s920_s19, %s914_s27 }
  0x2a   : > { %819 = vmatprep.subr.bf16.mxu0 %v1070_v0  ;;  %814 = vmatmul.mubr.msk.bf16.vlgmr.msra.gmra.mrb[0].mxu1 %vm362_vm1, %v345_v5 }
  0x2b   : > { %p917_p2 = pneg %p916_p1  ;;  %p923_p6 = por %p922_p5, %p921_p4 }
  0x2d   : > { %820 = vmatpush3.bf16.msra.mxu0 %v913_v8  ;;  %p924_p7 = pnand %p923_p6, %p917_p2 }
  0x30   : > { %822 = vmatmul.mubr.msk.bf16.vlgmr.msra.gmra.mrb[4].mxu0 %vm362_vm1, %v345_v5 }
  0xfb   : > { %v400_v9 = vpop.f32.mrb[0].mxu0 }
  0xfc   : > { %v406_v10 = vpack.c.bf16 %v400_v9, %v400_v9  ;;  %v807_v11 = vpop.f32.mrb[1].mxu0 }
  0xfd   : > { %v403_v12 = vpop.f32.mrb[2].mxu0  ;;  %v459_v13 = vpop.f32.mrb[0].mxu1 }
  0xfe   : > { %v808_v14 = vpop.f32.mrb[3].mxu0  ;;  %v465_v15 = vpack.c.bf16 %v459_v13, %v459_v13  ;;  %v815_v16 = vpop.f32.mrb[1].mxu1  ;;  %408 = vst.msk [vmem:[%s309_s8] sm:$0xf] %vm407_vm2, %v406_v10 }
  0xff   : > { %v462_v17 = vpop.f32.mrb[2].mxu1 }
 0x100   : > { %927 = shalt.err (!%p924_p7)
}
 0x101   : > { %s928_s26 = scalar_lea.hbm %s1223_s24, 64  ;;  %s932_s9 = scalar_lea.hbm %s1358_s4, 512 }
 0x102   : > { %p929_p9 = scmp.ne.s32.totalorder %s1223_s24, %s928_s26  ;;  %p933_p12 = scmp.lt.u32.totalorder %s1223_s24, %s1358_s4 }
 0x103   : > { %p934_p13 = scmp.lt.u32.totalorder %s932_s9, %s928_s26  ;;  %p936_p1 = scmp.lt.u32.totalorder %s928_s26, %s1223_s24 }
 0x104   : > { %p930_p10 = pnand %p929_p9, %p1163_p3 }
 0x105   : > { %p935_p0 = por %p934_p13, %p933_p12 }
 0x106   : > { %p931_p11 = pneg %p930_p10 }
 0x107   : > { %p937_p2 = por %p936_p1, %p935_p0 }
 0x109   : > { %p938_p4 = pnand %p937_p2, %p931_p11 }
 0x10b   : > { %941 = shalt.err (!%p938_p4)
}
 0x10c   : > { %825 = dma.vmem_to_hbm [thread:$0]  (%p1163_p3), %s1225_s15, 64, %s1223_s24, %s526_s14   ;;  %v816_v18 = vpop.f32.mrb[3].mxu1  ;;  %466 = vst.msk [vmem:[%s316_s18] sm:$0xf] %vm407_vm2, %v465_v15 }
 0x10d   : > { %s323_s27 = scalar_lea.vmem [#allocation6], %s1206_s29  ;;  %s531_s19 = scalar_lea.sflag [#allocation5], %s1214_s17 }
 0x10e   : > { %s1263_s16 = sshll.u32 %s323_s27, 4  ;;  %s942_s26 = scalar_lea.vmem %s1233_s25, 64  ;;  %s1296_s16 = int_to_ptr.vmem [resolvable:$true] %s1263_s16 }
 0x10f   : > { %p943_p5 = scmp.ne.s32.totalorder %s1233_s25, %s942_s26  ;;  %s1073_s8 = smov [#allocation4]  }
 0x110   : > { %s946_s20 = sshll.u32 %s1073_s8, 4  ;;  %s947_s20 = int_to_ptr.vmem [resolvable:$false] %s946_s20 }
 0x111   : > { %p944_p6 = pnand %p943_p5, %p1163_p3  ;;  %s948_s9 = scalar_lea.vmem %s947_s20, 128 }
 0x112   : > { %p949_p9 = scmp.lt.s32.totalorder %s1233_s25, %s947_s20  ;;  %p950_p10 = scmp.lt.s32.totalorder %s948_s9, %s942_s26 }
 0x113   : > { %p945_p7 = pneg %p944_p6 }
 0x114   : > { %p951_p11 = por %p950_p10, %p949_p9 }
 0x116   : > { %p952_p12 = pnand %p951_p11, %p945_p7 }
 0x118   : > { %955 = shalt.err (!%p952_p12)
}
 0x119   : > { %s956_s15 = scalar_lea.hbm %s1231_s13, 64  ;;  %s960_s14 = scalar_lea.hbm %s1359_s5, 512 }
 0x11a   : > { %p957_p13 = scmp.ne.s32.totalorder %s1231_s13, %s956_s15  ;;  %p961_p2 = scmp.lt.u32.totalorder %s1231_s13, %s1359_s5 }
 0x11b   : > { %p962_p4 = scmp.lt.u32.totalorder %s960_s14, %s956_s15  ;;  %p964_p6 = scmp.lt.u32.totalorder %s956_s15, %s1231_s13 }
 0x11c   : > { %p958_p0 = pnand %p957_p13, %p1163_p3 }
 0x11d   : > { %p963_p5 = por %p962_p4, %p961_p2 }
 0x11e   : > { %p959_p1 = pneg %p958_p0 }
 0x11f   : > { %p965_p7 = por %p964_p6, %p963_p5 }
 0x121   : > { %p966_p9 = pnand %p965_p7, %p959_p1 }
 0x123   : > { %969 = shalt.err (!%p966_p9)
}
 0x124   : > { %826 = dma.vmem_to_hbm [thread:$0]  (%p1163_p3), %s1233_s25, 64, %s1231_s13, %s531_s19   ;;  %v517_v19 = vpop.f32.mrb[4].mxu0 }
 0x125   : > { %v523_v20 = vpack.c.bf16 %v517_v19, %v517_v19  ;;  %v823_v21 = vpop.f32.mrb[5].mxu0  ;;  %s1293_s20 = scalar_lea.hbm %s1360_s6, %s1209_s7  ;;  %s970_s9 = scalar_lea.vmem %s1296_s16, 64 }
 0x126   : > { %v520_v22 = vpop.f32.mrb[6].mxu0  ;;  %p971_p10 = scmp.ne.s32.totalorder %s1296_s16, %s970_s9  ;;  %s1074_s25 = smov [#allocation6]  }
 0x127   : > { %524 = vst.msk [vmem:[%s323_s27] sm:$0xf] %vm407_vm2, %v523_v20  ;;  %v824_v23 = vpop.f32.mrb[7].mxu0  ;;  %s974_s13 = sshll.u32 %s1074_s25, 4  ;;  %s975_s13 = int_to_ptr.vmem [resolvable:$false] %s974_s13 }
 0x128   : > { %p972_p11 = pnand %p971_p10, %p1163_p3  ;;  %s976_s7 = scalar_lea.vmem %s975_s13, 128 }
 0x129   : > { %p977_p13 = scmp.lt.s32.totalorder %s1296_s16, %s975_s13  ;;  %p978_p0 = scmp.lt.s32.totalorder %s976_s7, %s970_s9 }
 0x12a   : > { %p973_p12 = pneg %p972_p11 }
 0x12b   : > { %p979_p1 = por %p978_p0, %p977_p13 }
 0x12d   : > { %p980_p2 = pnand %p979_p1, %p973_p12 }
 0x12f   : > { %983 = shalt.err (!%p980_p2)
}
 0x130   : > { %s984_s29 = scalar_lea.hbm %s1293_s20, 64  ;;  %s988_s18 = scalar_lea.hbm %s1360_s6, 512 }
 0x131   : > { %p985_p4 = scmp.ne.s32.totalorder %s1293_s20, %s984_s29  ;;  %p989_p7 = scmp.lt.u32.totalorder %s1293_s20, %s1360_s6 }
 0x132   : > { %p990_p9 = scmp.lt.u32.totalorder %s988_s18, %s984_s29  ;;  %p992_p11 = scmp.lt.u32.totalorder %s984_s29, %s1293_s20 }
 0x133   : > { %p986_p5 = pnand %p985_p4, %p1163_p3 }
 0x134   : > { %p991_p10 = por %p990_p9, %p989_p7 }
 0x135   : > { %p987_p6 = pneg %p986_p5 }
 0x136   : > { %p993_p12 = por %p992_p11, %p991_p10 }
 0x138   : > { %p994_p13 = pnand %p993_p12, %p987_p6 }
 0x13a   : > { %997 = shalt.err (!%p994_p13)
}
 0x13b   : > { %827 = dma.vmem_to_hbm [thread:$0]  (%p1163_p3), %s1296_s16, 64, %s1293_s20, %s531_s19  }
 0x13c PF: > { %p841_p0 = scmp.ge.s32.totalorder %s1068_s28, 2  ;;  %s593_s12 = sand.u32 1, %s1040_s21  }
 0x13d   : > { %s594_s30 = scalar_lea.sflag [#allocation3], %s593_s12 }
 0x13e   : > { %p832_p1 = pnand %p841_p0, %p1174_p8 }
 0x140   : > { %1031 = dma.done.wait (!%p832_p1), %s594_s30, 64  }
 0x141   : > { %1033 = vsyncadd (!%p832_p1), %s594_s30, 4294967232  ;;  %s1375_s26 = sadd.s32 4294967294, %s1068_s28  }
 0x142   : > { %s602_s8 = sand.u32 1, %s1375_s26  }
 0x143   : > { %s603_s10 = scalar_lea.sflag [#allocation5], %s602_s8 }
 0x144   : > { %1035 = dma.done.wait (!%p832_p1), %s603_s10, 128  }
 0x145   : > { %1037 = vsyncadd (!%p832_p1), %s603_s10, 4294967168  ;;  %s23_s28 = sadd.s32 1, %s1068_s28   ;;  %s1376_s17 = sld [smem:[#allocation13_spill]] }
 0x146   : > { %p20_p3 = scmp.ge.s32.totalorder %s23_s28, 10   ;;  %s1377_s24 = sld [smem:[#allocation9_spill]] }
 0x147   : > { %s1378_s25 = sld [smem:[#allocation10_spill]]  ;;  %s1379_s26 = sld [smem:[#allocation11_spill]] }
 0x148   : > { %s1380_s27 = sld [smem:[#allocation12_spill]]  ;;  %s1381_s21 = smov %s1044_s22 }
 0x149   : > { %s1382_s22 = smov %s1048_s23  ;;  %22 = sbr.rel (!%p20_p3) target bundleno = 7 (0x7), region = 112 }
 0x14b   : > { %s1383_s23 = smov %s1376_s17 }
 0x150   :  { %617 = vsyncpa [#allocation3], 1 }
 0x151   :  { %619 = vsyncpa [#allocation3 + $0x1], 1 }
 0x152   :  { %620 = vsyncpa [#allocation5], 1 }
 0x153   :  { %622 = vsyncpa [#allocation5 + $0x1], 1 }

</bundles_post_ra>
